<compile_context>
chip_gen: v7x
topology: tpu7x:2x2x1
jax: 0.10.0
libtpu: 0.0.40
codegen_flags: <defaults>
</compile_context>

<pallas_src>
import functools

import jax
import jax.numpy as jnp
from jax import lax
from jax.experimental import pallas as pl
from jax.experimental.pallas import tpu as pltpu


def _round_up(x: int, m: int) -> int:
    return (x + m - 1) // m * m


def _gather_kernel(idx_ref, tbl_ref, out_ref, buf_ref, sem_ref, *, rows_per_tile):
    # idx_ref: SMEM (n_pad,) int32      -- scalar-prefetched node ids
    # tbl_ref: HBM  (num_nodes, h_dim)  -- embedding table, stays in HBM
    # out_ref: VMEM (rows_per_tile, h_dim) output tile
    # buf_ref: VMEM (rows_per_tile, h_dim) gather landing buffer
    # sem_ref: DMA semaphores, one per row in flight
    base = pl.program_id(0) * rows_per_tile

    def _start(r, carry):
        row = idx_ref[base + r]
        pltpu.make_async_copy(tbl_ref.at[row], buf_ref.at[r], sem_ref.at[r]).start()
        return carry

    lax.fori_loop(0, rows_per_tile, _start, 0)

    def _wait(r, carry):
        # Same transfer size as the started copy; row index irrelevant for wait.
        pltpu.make_async_copy(tbl_ref.at[0], buf_ref.at[r], sem_ref.at[r]).wait()
        return carry

    lax.fori_loop(0, rows_per_tile, _wait, 0)

    out_ref[...] = buf_ref[...]


def embedding_lookup(table: jax.Array, indices: jax.Array, *, tile_n: int = 128) -> jax.Array:
    """Pallas TPU equivalent of table[indices] (torch.nn.Embedding lookup)."""
    num_nodes, h_dim = table.shape
    n = int(indices.shape[0])

    # Guard against out-of-range ids (TPU DMAs are not bounds-checked).
    idx = jnp.clip(indices.astype(jnp.int32), 0, num_nodes - 1)

    # Batch up to tile_n rows per grid step (sublane-dense output tile).
    tile_n = max(8, min(tile_n, _round_up(max(n, 1), 8)))
    n_pad = _round_up(max(n, 1), tile_n)
    idx_p = jnp.pad(idx, (0, n_pad - n))  # padded ids are 0 -> valid row

    n_tiles = n_pad // tile_n
    itemsize = jnp.dtype(table.dtype).itemsize

    kernel = functools.partial(_gather_kernel, rows_per_tile=tile_n)

    out = pl.pallas_call(
        kernel,
        out_shape=jax.ShapeDtypeStruct((n_pad, h_dim), table.dtype),
        grid_spec=pltpu.PrefetchScalarGridSpec(
            num_scalar_prefetch=1,          # idx_p -> SMEM, readable in kernel
            grid=(n_tiles,),
            in_specs=[pl.BlockSpec(memory_space=pl.ANY)],   # table stays in HBM
            out_specs=pl.BlockSpec((tile_n, h_dim), lambda i, idx: (i, 0)),
            scratch_shapes=[
                pltpu.VMEM((tile_n, h_dim), table.dtype),
                pltpu.SemaphoreType.DMA((tile_n,)),
            ],
        ),
        compiler_params=pltpu.CompilerParams(
            # Independent output tiles -> megacore-shardable on v7x.
            dimension_semantics=("parallel",),
        ),
        cost_estimate=pl.CostEstimate(
            flops=0,
            transcendentals=0,
            bytes_accessed=(
                n_pad * h_dim * itemsize      # gathered rows read from HBM
                + n_pad * h_dim * itemsize    # output write
                + n_pad * 4                   # indices
            ),
        ),
    )(idx_p, table)

    return out[:n]


class EmbeddingLayer:
    """JAX/Pallas mirror of the PyTorch EmbeddingLayer module."""

    def __init__(self, num_nodes: int, h_dim: int, key: jax.Array):
        # nn.Embedding default init: weight ~ N(0, 1)
        self.weight = jax.random.normal(key, (num_nodes, h_dim), jnp.float32)

    def __call__(self, g, h, r, norm):
        # g, r, norm unused, matching the PyTorch forward.
        idx = jnp.squeeze(h)                       # h.squeeze()
        flat = jnp.atleast_1d(idx).reshape(-1)     # robust for N == 1 / scalar
        out = embedding_lookup(self.weight, flat)
        return out.reshape(idx.shape + (self.weight.shape[1],))


if __name__ == "__main__":
    key = jax.random.PRNGKey(0)
    k_w, k_idx = jax.random.split(key)

    num_nodes, h_dim, n = 16, 32, 8
    layer = EmbeddingLayer(num_nodes, h_dim, k_w)

    # h is a column of node ids, shape (N, 1), as typically passed in RGCN code.
    h = jax.random.randint(k_idx, (n, 1), 0, num_nodes, dtype=jnp.int32)
    g = r = norm = None

    out = layer(g, h, r, norm)
    out = jax.block_until_ready(out)

    # Sanity check against plain JAX gather.
    ref = jnp.take(layer.weight, jnp.squeeze(h), axis=0)
    assert out.shape == (n, h_dim), out.shape
    assert jnp.allclose(out, ref, rtol=1e-6, atol=1e-6), "mismatch vs reference gather"

    print("KERNEL_OK")
</pallas_src>

<mosaic_0001>
module attributes {stable_mosaic.version = 11 : i64} {
  func.func @_gather_kernel(%arg0: i32, %arg1: memref<8xi32, #tpu.memory_space<smem>>, %arg2: memref<16x32xf32, #tpu.memory_space<any>>, %arg3: memref<8x32xf32, #tpu.memory_space<vmem>>, %arg4: memref<8x32xf32, #tpu.memory_space<vmem>>, %arg5: memref<8x!tpu.dma_semaphore, #tpu.memory_space<semaphore_mem>>) attributes {dimension_semantics = [#tpu.dimension_semantics<parallel>], iteration_bounds = array<i64: 1>, scalar_prefetch = 1 : i64, scratch_operands = 2 : i64, tpu.core_type = #tpu.core_type<tc>, window_params = [{}, {transform_indices = @transform_1, window_bounds = array<i64: 8, 32>}]} {
    %c8_i32 = arith.constant 8 : i32
    %0 = arith.muli %arg0, %c8_i32 : i32
    %c0_i32 = arith.constant 0 : i32
    %c8_i32_0 = arith.constant 8 : i32
    %1 = arith.addi %c0_i32, %c8_i32_0 : i32
    %c1_i32 = arith.constant 1 : i32
    scf.for %arg6 = %c0_i32 to %1 step %c1_i32  : i32 {
      %5 = arith.addi %0, %arg6 : i32
      %6 = arith.index_cast %5 : i32 to index
      %7 = memref.load %arg1[%6] : memref<8xi32, #tpu.memory_space<smem>>
      %c0_i32_9 = arith.constant 0 : i32
      %8 = tpu.memref_slice %arg2[%7, %c0_i32_9] : memref<16x32xf32, #tpu.memory_space<any>> -> memref<1x32xf32, #tpu.memory_space<any>>
      %9 = tpu.memref_squeeze %8 : memref<1x32xf32, #tpu.memory_space<any>> -> memref<32xf32, #tpu.memory_space<any>>
      %c0_i32_10 = arith.constant 0 : i32
      %10 = tpu.memref_slice %arg4[%arg6, %c0_i32_10] : memref<8x32xf32, #tpu.memory_space<vmem>> -> memref<1x32xf32, #tpu.memory_space<vmem>>
      %11 = tpu.memref_squeeze %10 : memref<1x32xf32, #tpu.memory_space<vmem>> -> memref<32xf32, #tpu.memory_space<vmem>>
      %12 = tpu.memref_slice %arg5[%arg6] : memref<8x!tpu.dma_semaphore, #tpu.memory_space<semaphore_mem>> -> memref<1x!tpu.dma_semaphore, #tpu.memory_space<semaphore_mem>>
      %13 = tpu.memref_squeeze %12 : memref<1x!tpu.dma_semaphore, #tpu.memory_space<semaphore_mem>> -> memref<!tpu.dma_semaphore, #tpu.memory_space<semaphore_mem>>
      tpu.enqueue_dma source(%9 : memref<32xf32, #tpu.memory_space<any>>) target(%11 : memref<32xf32, #tpu.memory_space<vmem>>) target_semaphore(%13 : memref<!tpu.dma_semaphore, #tpu.memory_space<semaphore_mem>>)
    }
    %c8_i32_1 = arith.constant 8 : i32
    %c0_i32_2 = arith.constant 0 : i32
    %c8_i32_3 = arith.constant 8 : i32
    %2 = arith.addi %c0_i32_2, %c8_i32_3 : i32
    %c1_i32_4 = arith.constant 1 : i32
    scf.for %arg6 = %c0_i32_2 to %2 step %c1_i32_4  : i32 {
      %c0_i32_9 = arith.constant 0 : i32
      %c0_i32_10 = arith.constant 0 : i32
      %5 = tpu.memref_slice %arg2[%c0_i32_9, %c0_i32_10] : memref<16x32xf32, #tpu.memory_space<any>> -> memref<1x32xf32, #tpu.memory_space<any>>
      %6 = tpu.memref_squeeze %5 : memref<1x32xf32, #tpu.memory_space<any>> -> memref<32xf32, #tpu.memory_space<any>>
      %c0_i32_11 = arith.constant 0 : i32
      %7 = tpu.memref_slice %arg4[%arg6, %c0_i32_11] : memref<8x32xf32, #tpu.memory_space<vmem>> -> memref<1x32xf32, #tpu.memory_space<vmem>>
      %8 = tpu.memref_squeeze %7 : memref<1x32xf32, #tpu.memory_space<vmem>> -> memref<32xf32, #tpu.memory_space<vmem>>
      %9 = tpu.memref_slice %arg5[%arg6] : memref<8x!tpu.dma_semaphore, #tpu.memory_space<semaphore_mem>> -> memref<1x!tpu.dma_semaphore, #tpu.memory_space<semaphore_mem>>
      %10 = tpu.memref_squeeze %9 : memref<1x!tpu.dma_semaphore, #tpu.memory_space<semaphore_mem>> -> memref<!tpu.dma_semaphore, #tpu.memory_space<semaphore_mem>>
      tpu.wait_dma2 semaphore(%10 : memref<!tpu.dma_semaphore, #tpu.memory_space<semaphore_mem>>) src(%6 : memref<32xf32, #tpu.memory_space<any>>) dst(%8 : memref<32xf32, #tpu.memory_space<vmem>>)
    }
    %c8_i32_5 = arith.constant 8 : i32
    %c0 = arith.constant 0 : index
    %c0_6 = arith.constant 0 : index
    %3 = vector.load %arg4[%c0, %c0_6] : memref<8x32xf32, #tpu.memory_space<vmem>>, vector<8x32xf32>
    %c0_7 = arith.constant 0 : index
    %c0_8 = arith.constant 0 : index
    %4 = vector.load %arg3[%c0_7, %c0_8] : memref<8x32xf32, #tpu.memory_space<vmem>>, vector<8x32xf32>
    tpu.vector_store %arg3[%c0_7, %c0_8], %3 {strides = array<i32>} : memref<8x32xf32, #tpu.memory_space<vmem>>, vector<8x32xf32>,
    return
  }
  func.func @transform_1(%arg0: i32, %arg1: memref<8xi32, #tpu.memory_space<smem>>) -> (i32, i32) {
    %c0_i32 = arith.constant 0 : i32
    %c0_i32_0 = arith.constant 0 : i32
    return %arg0, %c0_i32 : i32, i32
  }
}

</mosaic_0001>

<bundles_post_ra>
// kernel: tpu_custom_call.1
= control target key start
LH: loop header
LB: loop body
LE: loop exit
PB: predicated region body
PF: predicated region fallthrough
CT: control target
= control target key end

     0   :  { %s299_s0 = inlined_call_operand.hbm [shape: s32[8], index: 0, kind: input, shape index: {}]   ;;  %s300_s1 = inlined_call_operand.hbm [shape: f32[16,32], index: 1, kind: input, shape index: {}]   ;;  %s301_s2 = inlined_call_operand.hbm [shape: f32[8,32], index: 2, kind: output, shape index: {}]  }
   0x1   :  { %s159_s11 = scalar_lea.hbm %s299_s0, 16 }
   0x2   :  { %p160_p0 = scmp.ne.s32.totalorder %s299_s0, %s159_s11  ;;  %p163_p1 = scmp.lt.u32.totalorder %s159_s11, %s299_s0 }
   0x4   :  { %p165_p2 = pnand %p163_p1, %p160_p0 }
   0x6   :  { %168 = shalt.err (!%p165_p2)  }
   0x7   :  { %s237_s16 = smov [#allocation5]  }
   0x8   :  { %8 = dma.hbm_to_smem %s299_s0, 16, %s237_s16, [#allocation4] }
   0x9   :  { %223 = dma.done.wait [#allocation4], 16 }
   0xa   :  { %224 = vsyncadd [#allocation4], 4294967280 }
   0xb   :  { %10 = sfence }
   0xc   :  { %11 = vsyncpa [#allocation7], 0  ;;  %s267_s19 = smov 0  }
   0xd LB: > { %s20_s20 = sld [smem:[#allocation5 + %s231_s19]]  ;;  %s23_s21 = scalar_lea.vmem [#allocation2], %s231_s19  ;;  %s231_s19 = sphi %s267_s19, %s18_s19  }
   0xe   : > { %s32_s22 = sshll.u32 %s23_s21, 4  ;;  %s24_s26 = scalar_lea.sflag [#allocation3], %s231_s19  ;;  %s33_s22 = int_to_ptr.vmem [resolvable:$true] %s32_s22 }
   0xf   : > { %s171_s30 = scalar_lea.hbm %s300_s1, 256 }
  0x13   : > { %s132_s23 = sshll.u32 %s20_s20, 4 }
  0x14   : > { %s22_s25 = scalar_lea.hbm %s300_s1, %s132_s23 }
  0x15   : > { %s169_s27 = scalar_lea.hbm %s22_s25, 16  ;;  %p172_p4 = scmp.lt.u32.totalorder %s22_s25, %s300_s1 }
  0x16   : > { %p170_p3 = scmp.ne.s32.totalorder %s22_s25, %s169_s27  ;;  %p173_p5 = scmp.lt.u32.totalorder %s171_s30, %s169_s27 }
  0x17   : > { %p175_p7 = scmp.lt.u32.totalorder %s169_s27, %s22_s25 }
  0x18   : > { %p174_p6 = por %p173_p5, %p172_p4 }
  0x1a   : > { %p176_p8 = por %p175_p7, %p174_p6 }
  0x1c   : > { %p177_p9 = pnand %p176_p8, %p170_p3 }
  0x1e   : > { %180 = shalt.err (!%p177_p9)  }
  0x1f   : > { %s181_s5 = scalar_lea.vmem %s33_s22, 16  ;;  %s238_s6 = smov [#allocation2]  }
  0x20   : > { %p182_p10 = scmp.ne.s32.totalorder %s33_s22, %s181_s5  ;;  %s183_s7 = sshll.u32 %s238_s6, 4  ;;  %s184_s7 = int_to_ptr.vmem [resolvable:$false] %s183_s7 }
  0x21   : > { %s185_s8 = scalar_lea.vmem %s184_s7, 128  ;;  %p186_p11 = scmp.lt.s32.totalorder %s33_s22, %s184_s7 }
  0x22   : > { %p187_p12 = scmp.lt.s32.totalorder %s185_s8, %s181_s5 }
  0x24   : > { %p188_p13 = por %p187_p12, %p186_p11 }
  0x26   : > { %p189_p0 = pnand %p188_p13, %p182_p10 }
  0x28   : > { %192 = shalt.err (!%p189_p0)  }
  0x29   : > { %35 = dma.hbm_to_vmem [thread:$0]  %s22_s25, 16, %s33_s22, %s24_s26 }
  0x2a   : > { %s18_s19 = sadd.s32 1, %s231_s19  }
  0x2b   : > { %p15_p1 = scmp.ge.s32.totalorder %s18_s19, 8  }
  0x2c   :  { %s233_s9 = smov (%p15_p1), 0  }
  0x2d   :  { %17 = sbr.rel (!%p15_p1) target bundleno = 13 (0xd), region = 49 }
  0x34 LB: > { %s42_s10 = scalar_lea.sflag [#allocation3], %s235_s9  ;;  %s235_s9 = sphi %s233_s9, %s41_s9  }
  0x35   : > { %225 = dma.done.wait %s42_s10, 16 }
  0x36   : > { %226 = vsyncadd %s42_s10, 4294967280  ;;  %s41_s9 = sadd.s32 1, %s235_s9  }
  0x37   : > { %p38_p2 = scmp.ge.s32.totalorder %s41_s9, 8  }
  0x38   :  { %v45_v0 = vld [vmem:[#allocation2] sm:$0xff] (%p38_p2)  ;;  %vm46_vm0 = vcmask (%p38_p2), 261120   ;;  %s239_s11 = smov (%p38_p2), [#allocation6]  }
  0x39   :  { %40 = sbr.rel (!%p38_p2) target bundleno = 52 (0x34), region = 60  ;;  %47 = vst.msk [vmem:[#allocation6] sm:$0xff] (%p38_p2), %vm46_vm0, %v45_v0  ;;  %s54_s12 = sshll.u32 (%p38_p2), %s239_s11, 4  ;;  %s55_s12 = int_to_ptr.vmem [resolvable:$true] %s54_s12 }
  0x3a   :  { %s193_s13 = scalar_lea.vmem (%p38_p2), %s55_s12, 128  ;;  %p198_p4 = scmp.lt.s32.totalorder (%p38_p2), %s55_s12, %s55_s12 }
  0x3b   :  { %p194_p3 = scmp.ne.s32.totalorder (%p38_p2), %s55_s12, %s193_s13  ;;  %p199_p5 = scmp.lt.s32.totalorder (%p38_p2), %s193_s13, %s193_s13 }
  0x3d   :  { %p200_p6 = por (%p38_p2), %p199_p5, %p198_p4 }
  0x3f   :  { %p201_p7 = pnand (%p38_p2), %p200_p6, %p194_p3 }
  0x41   :  { %204 = shalt.err (!%p201_p7)
}
  0x42   :  { %s205_s15 = scalar_lea.hbm %s301_s2, 128 }
  0x43   :  { %p206_p8 = scmp.ne.s32.totalorder %s301_s2, %s205_s15  ;;  %p209_p9 = scmp.lt.u32.totalorder %s205_s15, %s301_s2 }
  0x45   :  { %p211_p10 = pnand %p209_p9, %p206_p8 }
  0x47   :  { %214 = shalt.err (!%p211_p10)
}
  0x48   :  { %57 = dma.vmem_to_hbm [thread:$0]  %s55_s12, 128, %s301_s2, [#allocation7]  }
  0x49   :  { %227 = dma.done.wait [#allocation7], 128  }
  0x4a   :  { %228 = vsyncadd [#allocation7], 4294967168 }
  0x4b   :  { %61 = vsyncpa [#allocation7], 1 }
  0x4c   :  { %62 = vsyncmov [#allocation3] }
  0x4f   :  { %s63_s22 = vpop.sfrf %62 }
  0x50   :  { %p133_p11 = scmp.ne.s32.totalorder %s63_s22, 0 }
  0x52   :  { %67 = shalt.err (%p133_p11)  }
  0x53   :  { %69 = vsyncmov [#allocation3 + $0x1] }
  0x56   :  { %s70_s23 = vpop.sfrf %69 }
  0x57   :  { %p134_p12 = scmp.ne.s32.totalorder %s70_s23, 0 }
  0x59   :  { %74 = shalt.err (%p134_p12)  }
  0x5a   :  { %76 = vsyncmov [#allocation3 + $0x2] }
  0x5d   :  { %s77_s0 = vpop.sfrf %76 }
  0x5e   :  { %p135_p13 = scmp.ne.s32.totalorder %s77_s0, 0 }
  0x60   :  { %81 = shalt.err (%p135_p13)  }
  0x61   :  { %83 = vsyncmov [#allocation3 + $0x3] }
  0x64   :  { %s84_s24 = vpop.sfrf %83 }
  0x65   :  { %p136_p0 = scmp.ne.s32.totalorder %s84_s24, 0 }
  0x67   :  { %88 = shalt.err (%p136_p0)  }
  0x68   :  { %90 = vsyncmov [#allocation3 + $0x4] }
  0x6b   :  { %s91_s2 = vpop.sfrf %90 }
  0x6c   :  { %p137_p1 = scmp.ne.s32.totalorder %s91_s2, 0 }
  0x6e   :  { %95 = shalt.err (%p137_p1)  }
  0x6f   :  { %97 = vsyncmov [#allocation3 + $0x5] }
  0x72   :  { %s98_s25 = vpop.sfrf %97 }
  0x73   :  { %p138_p2 = scmp.ne.s32.totalorder %s98_s25, 0 }
  0x75   :  { %102 = shalt.err (%p138_p2)  }
  0x76   :  { %104 = vsyncmov [#allocation3 + $0x6] }
  0x79   :  { %s105_s26 = vpop.sfrf %104 }
  0x7a   :  { %p139_p3 = scmp.ne.s32.totalorder %s105_s26, 0 }
  0x7c   :  { %109 = shalt.err (%p139_p3)  }
  0x7d   :  { %111 = vsyncmov [#allocation3 + $0x7] }
  0x80   :  { %s112_s27 = vpop.sfrf %111 }
  0x81   :  { %p140_p4 = scmp.ne.s32.totalorder %s112_s27, 0 }
  0x83   :  { %116 = shalt.err (%p140_p4)  }

</bundles_post_ra>
